<compile_context>
chip_gen: v5e
topology: v5e:2x2
jax: 0.10.0
libtpu: 0.0.40
codegen_flags: <defaults>
</compile_context>

<pallas_src>
import jax
import jax.numpy as jnp
from jax.experimental import pallas as pl
from jax.experimental.pallas import tpu as pltpu


def _att_layer_kernel(emb_ref, v_ref, out_ref):
    # emb_ref : (K, TN, D)  stacked-embeddings tile, native dtype
    # v_ref   : (1, D)      folded attention vector v = attention_mat @ attention^T (f32)
    # out_ref : (TN, D)     mixed-embeddings output tile
    e = emb_ref[...]                                    # (K, TN, D), native dtype
    v = v_ref[...]                                      # (1, D), f32

    # Logits, kept in keepdims form so TN stays on sublanes (no relayout later).
    # e * v promotes to f32 (no materialized full-tile cast).
    w = jnp.sum(e * v[None, :, :], axis=-1, keepdims=True)   # (K, TN, 1) f32

    # Exact softmax over the stacked-embeddings axis K.
    m = jnp.max(w, axis=0, keepdims=True)                    # (1, TN, 1)
    p = jnp.exp(w - m)                                       # (K, TN, 1)
    score = p / jnp.sum(p, axis=0, keepdims=True)            # (K, TN, 1) f32

    # Weighted mix: sum_k score[k, n] * e[k, n, :]  (f32, lane-broadcast of score)
    mixed = jnp.sum(score * e, axis=0)                       # (TN, D) f32
    out_ref[...] = mixed.astype(out_ref.dtype)

    # TODO(synk): on v7x, if the XLU lane-reduce for the logits ever becomes
    # the binding slot, it can be moved to the (idle) MXU via a (K*TN, D) x
    # (D, 1) dot; not needed while the kernel is HBM-bound.


def _vmem_params():
    """Generation-gated (tile budget, Mosaic scoped-VMEM limit) in bytes."""
    mib = 1024 * 1024
    try:
        cap = getattr(pltpu.get_tpu_info(), "vmem_capacity_bytes", None)
    except Exception:
        cap = None
    if cap is None:
        return 16 * mib, 32 * mib           # unknown chip: conservative
    if cap <= 64 * mib:                     # v7x-class: 64 MiB VMEM per TC
        return 16 * mib, 40 * mib
    return 48 * mib, 96 * mib               # v5e / v6e: 128 MiB VMEM


def att_layer(embs_stacked, attention_mat, attention, *, tile_n=None,
              target_steps=4):
    """embs_stacked: [K, N, D]; attention_mat: [D, D]; attention: [1, D] -> [N, D]."""
    K, N, D = embs_stacked.shape
    dtype = embs_stacked.dtype
    itemsize = jnp.dtype(dtype).itemsize

    # --- algebraic fold: v = attention_mat @ attention^T  (shape [1, D], f32) ---
    v = (attention_mat.astype(jnp.float32)
         @ attention.astype(jnp.float32).reshape(D, 1)).reshape(1, D)

    vmem_budget, vmem_limit = _vmem_params()

    # Sublane packing: 8 rows for 32-bit dtypes, 16 for bf16, 32 for int8/fp8.
    mult = max(8, 32 // itemsize)

    if tile_n is None:
        per_row = (2 * K * D * itemsize     # double-buffered input tile
                   + 2 * D * itemsize       # double-buffered output tile
                   + 4 * K * D              # f32 e*v product
                   + 4 * D                  # f32 mixed tile
                   + 16 * K)                # f32 logits / softmax temporaries
        tile_budget = max(mult, (int(vmem_budget // per_row) // mult) * mult)
        # Keep >= target_steps grid steps when N allows it (megacore sharding on
        # v7x + DMA/compute pipelining), otherwise one tile covers everything.
        tile_split = pl.cdiv(pl.cdiv(N, target_steps), mult) * mult
        tile_n = max(mult, min(tile_budget, tile_split))
    assert tile_n % mult == 0, "tile_n must match the dtype's sublane packing"

    # Ragged grid: Pallas masks the partial last block, so no row padding pass.
    grid = (pl.cdiv(N, tile_n),)

    out = pl.pallas_call(
        _att_layer_kernel,
        out_shape=jax.ShapeDtypeStruct((N, D), dtype),
        grid_spec=pltpu.PrefetchScalarGridSpec(
            num_scalar_prefetch=0,
            grid=grid,
            in_specs=[
                pl.BlockSpec((K, tile_n, D), lambda i: (0, i, 0)),
                pl.BlockSpec((1, D), lambda i: (0, 0)),
            ],
            out_specs=pl.BlockSpec((tile_n, D), lambda i: (i, 0)),
        ),
        compiler_params=pltpu.CompilerParams(
            dimension_semantics=("parallel",),
            vmem_limit_bytes=vmem_limit,
        ),
    )(embs_stacked, v)

    return out


def att_layer_ref(embs_stacked, attention_mat, attention):
    # pure-JAX reference mirroring the PyTorch forward
    proj = jnp.einsum('knd,de->kne', embs_stacked, attention_mat)
    w = jnp.sum(attention[None, :, :] * proj, axis=-1)         # (K, N)
    score = jax.nn.softmax(w, axis=0)                          # softmax over dim 0
    return jnp.sum(score[:, :, None] * embs_stacked, axis=0)   # (N, D)


if __name__ == "__main__":
    key = jax.random.PRNGKey(0)
    # 3 input embeddings, 20 rows (exercises the ragged last block), dim 32
    # (exercises the un-padded, full-D lane block).
    K, N, D = 3, 20, 32

    k_emb, k_mat, k_att = jax.random.split(key, 3)
    embs = jax.random.normal(k_emb, (K, N, D), dtype=jnp.float32)
    attention_mat = jax.random.normal(k_mat, (D, D), dtype=jnp.float32)   # nn.Parameter([dim, dim])
    attention = jax.random.normal(k_att, (1, D), dtype=jnp.float32)       # nn.Parameter([1, dim])

    out = jax.block_until_ready(att_layer(embs, attention_mat, attention))
    ref = att_layer_ref(embs, attention_mat, attention)

    assert out.shape == (N, D)
    assert jnp.allclose(out, ref, atol=1e-4, rtol=1e-4), "mismatch vs reference"

    print("KERNEL_OK")
</pallas_src>

<mosaic_0001>
module attributes {stable_mosaic.version = 11 : i64} {
  func.func @_att_layer_kernel(%arg0: i32, %arg1: memref<3x8x32xf32, #tpu.memory_space<vmem>>, %arg2: memref<1x32xf32, #tpu.memory_space<vmem>>, %arg3: memref<8x32xf32, #tpu.memory_space<vmem>>) attributes {dimension_semantics = [#tpu.dimension_semantics<parallel>], iteration_bounds = array<i64: 3>, scalar_prefetch = 0 : i64, scratch_operands = 0 : i64, tpu.core_type = #tpu.core_type<tc>, window_params = [{transform_indices = @transform_0, window_bounds = array<i64: 3, 8, 32>}, {pipeline_mode = #tpu.pipeline_mode<synchronous>, transform_indices = @transform_1, window_bounds = array<i64: 1, 32>}, {transform_indices = @transform_2, window_bounds = array<i64: 8, 32>}]} {
    %c0 = arith.constant 0 : index
    %c0_0 = arith.constant 0 : index
    %c0_1 = arith.constant 0 : index
    %0 = vector.load %arg1[%c0, %c0_0, %c0_1] : memref<3x8x32xf32, #tpu.memory_space<vmem>>, vector<3x8x32xf32>
    %c0_2 = arith.constant 0 : index
    %c0_3 = arith.constant 0 : index
    %1 = vector.load %arg2[%c0_2, %c0_3] : memref<1x32xf32, #tpu.memory_space<vmem>>, vector<1x32xf32>
    %2 = vector.shape_cast %1 : vector<1x32xf32> to vector<1x1x32xf32>
    %3 = vector.broadcast %2 : vector<1x1x32xf32> to vector<3x8x32xf32>
    %4 = arith.mulf %0, %3 : vector<3x8x32xf32>
    %cst = arith.constant dense<0.000000e+00> : vector<3x8xf32>
    %5 = vector.multi_reduction <add>, %4, %cst [2] : vector<3x8x32xf32> to vector<3x8xf32>
    %6 = vector.shape_cast %5 : vector<3x8xf32> to vector<3x8x1xf32>
    %cst_4 = arith.constant dense<0xFF800000> : vector<8x1xf32>
    %7 = vector.multi_reduction <maximumf>, %6, %cst_4 [0] : vector<3x8x1xf32> to vector<8x1xf32>
    %8 = vector.shape_cast %7 : vector<8x1xf32> to vector<1x8x1xf32>
    %9 = vector.broadcast %8 : vector<1x8x1xf32> to vector<3x8x1xf32>
    %10 = arith.subf %6, %9 : vector<3x8x1xf32>
    %11 = math.exp %10 : vector<3x8x1xf32>
    %cst_5 = arith.constant dense<0.000000e+00> : vector<8x1xf32>
    %12 = vector.multi_reduction <add>, %11, %cst_5 [0] : vector<3x8x1xf32> to vector<8x1xf32>
    %13 = vector.shape_cast %12 : vector<8x1xf32> to vector<1x8x1xf32>
    %14 = vector.broadcast %13 : vector<1x8x1xf32> to vector<3x8x1xf32>
    %15 = arith.divf %11, %14 : vector<3x8x1xf32>
    %16 = vector.broadcast %15 : vector<3x8x1xf32> to vector<3x8x32xf32>
    %17 = arith.mulf %16, %0 : vector<3x8x32xf32>
    %cst_6 = arith.constant dense<0.000000e+00> : vector<8x32xf32>
    %18 = vector.multi_reduction <add>, %17, %cst_6 [0] : vector<3x8x32xf32> to vector<8x32xf32>
    %c0_7 = arith.constant 0 : index
    %c0_8 = arith.constant 0 : index
    %19 = vector.load %arg3[%c0_7, %c0_8] : memref<8x32xf32, #tpu.memory_space<vmem>>, vector<8x32xf32>
    tpu.vector_store %arg3[%c0_7, %c0_8], %18 {strides = array<i32>} : memref<8x32xf32, #tpu.memory_space<vmem>>, vector<8x32xf32>,
    return
  }
  func.func @transform_0(%arg0: i32) -> (i32, i32, i32) {
    %c0_i32 = arith.constant 0 : i32
    %c0_i32_0 = arith.constant 0 : i32
    %c0_i32_1 = arith.constant 0 : i32
    return %c0_i32, %arg0, %c0_i32_0 : i32, i32, i32
  }
  func.func @transform_1(%arg0: i32) -> (i32, i32) {
    %c0_i32 = arith.constant 0 : i32
    %c0_i32_0 = arith.constant 0 : i32
    %c0_i32_1 = arith.constant 0 : i32
    return %c0_i32, %c0_i32_0 : i32, i32
  }
  func.func @transform_2(%arg0: i32) -> (i32, i32) {
    %c0_i32 = arith.constant 0 : i32
    %c0_i32_0 = arith.constant 0 : i32
    return %arg0, %c0_i32 : i32, i32
  }
}

</mosaic_0001>

<bundles_post_ra>
// kernel: tpu_custom_call.1
= control target key start
LH: loop header
LB: loop body
LE: loop exit
PB: predicated region body
PF: predicated region fallthrough
CT: control target
= control target key end

     0   :  { %7 = vsyncpa [#allocation3], 0  ;;  %s715_s0 = inlined_call_operand.hbm [shape: f32[3,20,32], index: 0, kind: input, shape index: {}]   ;;  %s716_s1 = inlined_call_operand.hbm [shape: f32[1,32], index: 1, kind: input, shape index: {}]   ;;  %s717_s2 = inlined_call_operand.hbm [shape: f32[20,32], index: 2, kind: output, shape index: {}]  }
   0x1   :  { %9 = vsyncpa [#allocation3 + $0x1], 0 }
   0x2   :  { %10 = vsyncpa [#allocation6], 0 }
   0x3   :  { %11 = vsyncpa [#allocation4], 0 }
   0x4   :  { %13 = vsyncpa [#allocation4 + $0x1], 0  ;;  %s567_s9 = smov 0   ;;  %s569_s10 = smov 0  }
   0x5   :  { %s571_s11 = smov 0   ;;  %s573_s12 = smov 0  }
   0x6 LB: > { %s588_s13 = sadd.s32 4294967295, %s546_s12   ;;  %s333_s14 = sadd.s32 4294967294, %s546_s12   ;;  %s546_s12 = sphi %s573_s12, %s727_s12   ;;  %s542_s11 = sphi %s571_s11, %s726_s11   ;;  %s538_s10 = sphi %s569_s10, %s725_s10   ;;  %s534_s9 = sphi %s567_s9, %s724_s9  }
   0x7   : > { %s592_s15 = sadd.s32 1, %s546_s12   ;;  %s26_s16 = sadd.s32 1, %s542_s11 }
   0x8   : > { %s23_s17 = ssub.s32 %s546_s12, %s592_s15  ;;  %p33_p0 = scmp.ne.s32.totalorder %s542_s11, %s538_s10 }
   0x9   : > { %p24_p1 = scmp.eq.s32.totalorder %s23_s17, 0  ;;  %p34_p2 = scmp.eq.s32.totalorder %s546_s12, 0 }
   0xa   : > { %p39_p3 = scmp.ne.s32.totalorder %s538_s10, %s534_s9  ;;  %p40_p4 = scmp.eq.s32.totalorder %s588_s13, 0 }
   0xb   : > { %s604_s18 = scalar_select %p24_p1, %s542_s11, %s26_s16  }
   0xc   : > { %p606_p5 = por %p34_p2, %p33_p0  ;;  %p612_p6 = por %p40_p4, %p39_p3 }
   0xd   : > { %p84_p7 = scmp.eq.s32.totalorder %s588_s13, 2  ;;  %p90_p8 = scmp.eq.s32.totalorder %s333_s14, 2 }
   0xe   : > { %p334_p9 = scmp.ge.s32.totalorder %s546_s12, 1  ;;  %p97_p10 = scmp.lt.s32.totalorder %s546_s12, 4 }
   0xf   : > { %p619_p11 = por %p84_p7, %p33_p0  ;;  %p623_p12 = por %p90_p8, %p39_p3 }
  0x10   : > { %p627_p13 = pnand %p334_p9, %p97_p10  ;;  %s109_s26 = sshll.u32 %s716_s1, 4  ;;  %s110_s26 = int_to_ptr.hbm [resolvable:$true] %s109_s26 }
  0x11   : > { %s548_s27 = smov [#allocation5]   ;;  %p368_p2 = scmp.lt.s32.totalorder %s546_s12, 3 }
  0x12   : > { %p355_p1 = pneg %p627_p13  ;;  %s111_s28 = sshll.u32 %s548_s27, 4  ;;  %s112_s28 = int_to_ptr.vmem [resolvable:$true] %s111_s28 }
  0x13   : > { %s122_s29 = sand.u32 1, %s542_s11   ;;  %p642_p3 = pnand %p368_p2, %p606_p5 }
  0x14   : > { %p356_p0 = pnand %p355_p1, %p40_p4  ;;  %s345_s3 = smul.u32 24, %s122_s29 }
  0x15   : > { %s337_s4 = sshll.u32 %s546_s12, 3  ;;  %s123_s17 = scalar_lea.sflag [#allocation3], %s122_s29 }
  0x16   : > { %358 = dma.hbm_to_vmem [thread:$0]  (!%p356_p0), %s110_s26, 16, %s112_s28, [#allocation6]  }
  0x17   : > { %s130_s7 = scalar_lea.hbm %s715_s0, %s337_s4  ;;  %s126_s8 = scalar_lea.vmem [#allocation2], %s345_s3 }
  0x18   : > { %s133_s14 = sshll.u32 %s126_s8, 4  ;;  %s131_s16 = sshll.u32 %s130_s7, 4  ;;  %s134_s14 = int_to_ptr.vmem [resolvable:$true] %s133_s14  ;;  %s132_s16 = int_to_ptr.hbm [resolvable:$true] %s131_s16 }
  0x19   : > { %s446_s24 = sshra.s32 %s132_s16, 4  ;;  %p450_p7 = pneg %p642_p3  ;;  %s447_s24 = int_to_ptr.hbm [resolvable:$true] %s446_s24 }
  0x1a   : > { %s448_s19 = scalar_lea.hbm %s447_s24, 24  ;;  %s453_s27 = scalar_lea.hbm %s715_s0, 72 }
  0x1b   : > { %p449_p5 = scmp.ne.s32.totalorder %s447_s24, %s448_s19  ;;  %p454_p10 = scmp.lt.s32.totalorder %s447_s24, %s715_s0 }
  0x1c   : > { %p455_p1 = scmp.lt.s32.totalorder %s453_s27, %s448_s19 }
  0x1d   : > { %p451_p8 = pnand %p450_p7, %p449_p5 }
  0x1e   : > { %p456_p0 = por %p455_p1, %p454_p10 }
  0x1f   : > { %p452_p9 = pneg %p451_p8 }
  0x21   : > { %p457_p2 = pnand %p456_p0, %p452_p9 }
  0x23   : > { %460 = shalt.err (!%p457_p2)
}
  0x24   : > { %s549_s29 = smov 384   ;;  %s550_s3 = smov 128  }
  0x25   : > { %s551_s5 = smov 8   ;;  %145 = sbr.rel (%p627_p13) target bundleno = 223 (0xdf), region = 28 }
  0x26   : > { %362 = dma.hbm_to_vmem [thread:$0]  (!%p642_p3), %s132_s16, 384, %s134_s14, %s123_s17, %s549_s29, %s550_s3, %s551_s5  }
  0x27   : > { %s663_s6 = sand.u32 (!%p627_p13), 1, %s538_s10  }
  0x28   : > { %s346_s7 = smul.u32 (!%p627_p13), 24, %s663_s6  ;;  %s148_s8 = scalar_lea.sflag (!%p627_p13), [#allocation3], %s663_s6 }
  0x2a   : > { %s151_s24 = scalar_lea.vmem [#allocation2], %s346_s7 }
  0x2b   : > { %521 = dma.done.wait (%p612_p6), %s148_s8, 384  }
  0x2c   : > { %523 = vsyncadd (%p612_p6), %s148_s8, 4294966912 }
  0x2d   : > { %525 = dma.done.wait (%p40_p4), [#allocation6], 16  }
  0x2e   : > { %527 = vsyncadd (%p40_p4), [#allocation6], 4294967280  ;;  %v178_v0 = vld [vmem:[%s151_s24] sm:$0xff]  ;;  %v407_v1 = vld [vmem:[#allocation5] ss:$0 sm:$0xff]  ;;  %vm188_vm0 = vcmask 261120  }
  0x2f   : > { %v180_v2 = vld [vmem:[%s151_s24 + $0x10] sm:$0xff]  ;;  %v185_v3 = vmul.f32 %v407_v1, %v178_v0  ;;  %v179_v5 = vld [vmem:[%s151_s24 + $0x8] sm:$0xff]  ;;  %s340_s20 = sshll.u32 %s663_s6, 3  ;;  %s342_s23 = sshll.u32 %s588_s13, 3 }
  0x30   : > { %v187_v4 = vmul.f32 %v407_v1, %v180_v2  ;;  %v186_v8 = vmul.f32 %v407_v1, %v179_v5  ;;  %s248_s16 = scalar_lea.hbm %s717_s2, %s342_s23  ;;  %s177_s17 = scalar_lea.vmem [#allocation7], %s340_s20 }
  0x31   : > { %v189_v6 = vsel %vm188_vm0, %v185_v3, 0.0  ;;  %s250_s19 = sshll.u32 %s177_s17, 4  ;;  %s252_s13 = sshll.u32 %s248_s16, 4  ;;  %s251_s19 = int_to_ptr.vmem [resolvable:$true] %s250_s19  ;;  %s253_s13 = int_to_ptr.hbm [resolvable:$true] %s252_s13 }
  0x32   : > { %v195_v7 = vsel %vm188_vm0, %v187_v4, 0.0  ;;  %190 = vadd.xlane.f32.xlu0 %v189_v6  ;;  %v192_v9 = vsel %vm188_vm0, %v186_v8, 0.0  ;;  %s238_s25 = scalar_lea.sflag [#allocation4], %s663_s6  ;;  %s490_s26 = sshra.s32 %s253_s13, 4  ;;  %s491_s26 = int_to_ptr.hbm [resolvable:$true] %s490_s26 }
  0x33   : > { %196 = vadd.xlane.f32.xlu1 %v195_v7  ;;  %s492_s27 = scalar_lea.hbm %s491_s26, 8  ;;  %s496_s29 = scalar_lea.hbm %s717_s2, 24 }
  0x34   : > { %p493_p4 = scmp.ne.s32.totalorder %s491_s26, %s492_s27  ;;  %p497_p3 = scmp.lt.s32.totalorder %s491_s26, %s717_s2 }
  0x35   : > { %p498_p5 = scmp.lt.s32.totalorder %s496_s29, %s492_s27 }
  0x36   : > { %p494_p6 = pnand %p493_p4, %p619_p11 }
  0x37   : > { %p499_p7 = por %p498_p5, %p497_p3 }
  0x38   : > { %p495_p13 = pneg %p494_p6 }
  0x3a   : > { %193 = vadd.xlane.f32.xlu0 %v192_v9  ;;  %p500_p8 = pnand %p499_p7, %p495_p13 }
  0xa5   : > { %v191_v10 = vpop.xlane.xlu0 %190 }
  0xa6   : > { %v197_v12 = vpop.xlane.xlu1 %196 }
  0xad   : > { %v194_v11 = vpop.xlane.xlu0 %193 }
  0xae   : > { %v198_v13 = vmax.f32 %v191_v10, %v194_v11 }
  0xb0   : > { %v199_v14 = vmax.f32 %v198_v13, %v197_v12 }
  0xb2   : > { %v200_v15 = vsub.f32 %v191_v10, %v199_v14  ;;  %v201_v16 = vsub.f32 %v194_v11, %v199_v14  ;;  %v202_v17 = vsub.f32 %v197_v12, %v199_v14 }
  0xb4   : > { %v203_v18 = vmul.f32 1.442695, %v200_v15  ;;  %v205_v19 = vmul.f32 1.442695, %v201_v16  ;;  %v207_v20 = vmul.f32 1.442695, %v202_v17 }
  0xb6   : > { %408 = vpow2.f32 %v203_v18 }
  0xb7   : > { %410 = vpow2.f32 %v205_v19 }
  0xb8   : > { %412 = vpow2.f32 %v207_v20 }
  0xbc   : > { %v409_v21 = vpop.eup %408 }
  0xbd   : > { %v411_v22 = vpop.eup %410 }
  0xbe   : > { %v209_v23 = vadd.f32 %v411_v22, %v409_v21  ;;  %v413_v24 = vpop.eup %412 }
  0xc0   : > { %v210_v25 = vadd.f32 %v413_v24, %v209_v23 }
  0xc2   : > { %414 = vrcp.f32 %v210_v25  ;;  %v222_v29 = vand.u32 2147483648, %v210_v25  ;;  %v220_v31 = vand.u32 2147483647, %v210_v25  ;;  %vm216_vm2 = vweird.f32 %v210_v25 }
  0xc4   : > { %v223_v33 = vor.u32 1.1754944e-38, %v222_v29  ;;  %vm221_vm4 = vcmp.eq.f32.partialorder %v220_v31, 8.507059e+37 }
  0xc8   : > { %v415_v26 = vpop.eup %414 }
  0xc9   : > { %v212_v27 = vmul.f32 %v415_v26, %v210_v25  ;;  %vm217_vm1 = vweird.f32 %v415_v26 }
  0xca   : > { %vm218_vm3 = vmor %vm216_vm2, %vm217_vm1 }
  0xcb   : > { %v213_v28 = vsub.f32 1.0, %v212_v27 }
  0xcd   : > { %v214_v30 = vmul.f32 %v415_v26, %v213_v28 }
  0xcf   : > { %v215_v32 = vadd.f32 %v415_v26, %v214_v30 }
  0xd1   : > { %v219_v34 = vsel %vm218_vm3, %v415_v26, %v215_v32 }
  0xd2   : > { %v224_v35 = vsel %vm221_vm4, %v223_v33, %v219_v34 }
  0xd3   : > { %v225_v36 = vmul.f32 %v409_v21, %v224_v35  ;;  %v226_v37 = vmul.f32 %v411_v22, %v224_v35  ;;  %v227_v38 = vmul.f32 %v413_v24, %v224_v35 }
  0xd5   : > { %v228_v39 = vmul.f32 %v225_v36, %v178_v0  ;;  %v229_v40 = vmul.f32 %v226_v37, %v179_v5  ;;  %v230_v41 = vmul.f32 %v227_v38, %v180_v2 }
  0xd7   : > { %v231_v42 = vsel %vm188_vm0, %v228_v39, 0.0  ;;  %v232_v43 = vsel %vm188_vm0, %v229_v40, 0.0  ;;  %v234_v45 = vsel %vm188_vm0, %v230_v41, 0.0 }
  0xd8   : > { %v233_v44 = vadd.f32 %v232_v43, %v231_v42 }
  0xda   : > { %v235_v46 = vadd.f32 %v234_v45, %v233_v44 }
  0xdc   : > { %236 = vst.msk [vmem:[%s177_s17] sm:$0xff] %vm188_vm0, %v235_v46 }
  0xdd   : > { %503 = shalt.err (!%p500_p8)
}
  0xde   : > { %353 = dma.vmem_to_hbm [thread:$0]  (%p619_p11), %s251_s19, 128, %s253_s13, %s238_s25  }
  0xdf PF: > { %p370_p9 = scmp.ge.s32.totalorder %s546_s12, 2  ;;  %s264_s6 = sand.u32 1, %s534_s9  }
  0xe0   : > { %s265_s7 = scalar_lea.sflag [#allocation4], %s264_s6 }
  0xe1   : > { %p364_p10 = pnand %p370_p9, %p623_p12 }
  0xe3   : > { %p365_p1 = pneg %p364_p10 }
  0xe5   : > { %529 = dma.done.wait (%p365_p1), %s265_s7, 128  }
  0xe6   : > { %531 = vsyncadd (%p365_p1), %s265_s7, 4294967168  ;;  %p16_p0 = scmp.ge.s32.totalorder %s592_s15, 5   ;;  %s724_s9 = smov %s538_s10 }
  0xe7   : > { %s725_s10 = smov %s542_s11  ;;  %s726_s11 = smov %s604_s18 }
  0xe8   : > { %s727_s12 = smov %s592_s15  ;;  %18 = sbr.rel (!%p16_p0) target bundleno = 6 (0x6), region = 77 }
  0xed   :  { %271 = vsyncpa [#allocation3], 1 }
  0xee   :  { %273 = vsyncpa [#allocation3 + $0x1], 1 }
  0xef   :  { %274 = vsyncpa [#allocation6], 1 }
  0xf0   :  { %275 = vsyncpa [#allocation4], 1 }
  0xf1   :  { %277 = vsyncpa [#allocation4 + $0x1], 1 }

</bundles_post_ra>
